<compile_context>
chip_gen: v6e
topology: v6e:2x2x1
jax: 0.10.0
libtpu: 0.0.40
codegen_flags: <defaults>
</compile_context>

<pallas_src>
import functools

import jax
import jax.numpy as jnp
from jax.experimental import pallas as pl
from jax.experimental.pallas import tpu as pltpu


def _pe_kernel(x_ref, o_ref, *, scales):
    # x_ref: (3, T)   o_ref: (6*L, T)   -- rows on the 128-lane axis.
    x = x_ref[...]
    half = 3 * len(scales)
    for i, s in enumerate(scales):
        xe = x * s                                               # VPU scalar mul
        o_ref[3 * i:3 * i + 3, :] = jnp.sin(xe)                  # sin half
        o_ref[half + 3 * i:half + 3 * i + 3, :] = jnp.cos(xe)    # sin(x+pi/2)==cos(x)


def _ipe_kernel(x_ref, y_ref, o_ref, *, scales):
    # Integrated positional encoding (y is not None in the torch module).
    x = x_ref[...]
    y = y_ref[...]
    half = 3 * len(scales)
    for i, s in enumerate(scales):
        xe = x * s
        w = jnp.exp((-0.5 * s * s) * y)                          # one exp per freq, reused
        o_ref[3 * i:3 * i + 3, :] = w * jnp.sin(xe)
        o_ref[half + 3 * i:half + 3 * i + 3, :] = w * jnp.cos(xe)


class PositionalEncoding:
    """JAX/Pallas port of run_nerf_helpers.PositionalEncoding."""

    def __init__(self, min_deg, max_deg):
        self.min_deg = min_deg
        self.max_deg = max_deg
        self.num_freqs = max_deg - min_deg
        # Non-trainable buffer in torch; kept for the reference / API parity.
        self.scales = jnp.asarray(
            [2.0 ** i for i in range(min_deg, max_deg)], dtype=jnp.float32
        )
        # Compile-time constants baked into the kernel (no DMA stream for them).
        self._scales_py = tuple(float(2.0 ** i) for i in range(min_deg, max_deg))
        self.out_dim = self.num_freqs * 3 * 2

    def _tiling(self, rows):
        out_dim = self.out_dim
        # Target ~2 MiB of f32 output per grid step; tile must be a multiple of 128.
        target_out_bytes = 2 * 1024 * 1024
        tile = (target_out_bytes // (out_dim * 4)) // 128 * 128
        tile = max(128, min(8192, tile))
        rows_up = ((rows + 127) // 128) * 128
        tile = min(tile, rows_up)
        rows_pad = ((rows + tile - 1) // tile) * tile
        return tile, rows_pad

    def __call__(self, x, y=None):
        orig_shape = x.shape                     # (..., 3)
        assert orig_shape[-1] == 3
        rows = 1
        for d in orig_shape[:-1]:
            rows *= d
        out_dim = self.out_dim

        # Lane-dense layout: (rows, 3) -> (3, rows_pad), rows on the lane axis.
        xt = x.reshape(rows, 3).astype(jnp.float32).T
        tile, rows_pad = self._tiling(rows)
        if rows_pad > rows:
            xt = jnp.pad(xt, ((0, 0), (0, rows_pad - rows)))

        grid = (rows_pad // tile,)
        in_spec = pl.BlockSpec((3, tile), lambda i: (0, i))
        out_spec = pl.BlockSpec((out_dim, tile), lambda i: (0, i))
        out_shape = jax.ShapeDtypeStruct((out_dim, rows_pad), jnp.float32)
        cparams = pltpu.CompilerParams(dimension_semantics=("parallel",))

        if y is None:
            kernel = functools.partial(_pe_kernel, scales=self._scales_py)
            out_t = pl.pallas_call(
                kernel,
                out_shape=out_shape,
                grid_spec=pltpu.PrefetchScalarGridSpec(
                    num_scalar_prefetch=0,
                    grid=grid,
                    in_specs=[in_spec],
                    out_specs=out_spec,
                ),
                compiler_params=cparams,
            )(xt)
        else:
            yt = y.reshape(rows, 3).astype(jnp.float32).T
            if rows_pad > rows:
                yt = jnp.pad(yt, ((0, 0), (0, rows_pad - rows)))
            kernel = functools.partial(_ipe_kernel, scales=self._scales_py)
            out_t = pl.pallas_call(
                kernel,
                out_shape=out_shape,
                grid_spec=pltpu.PrefetchScalarGridSpec(
                    num_scalar_prefetch=0,
                    grid=grid,
                    in_specs=[in_spec, in_spec],
                    out_specs=out_spec,
                ),
                compiler_params=cparams,
            )(xt, yt)

        # Layout plumbing back to the PyTorch shape: (out_dim, rows_pad) -> (..., out_dim).
        out = out_t[:, :rows].T
        return out.reshape(tuple(orig_shape[:-1]) + (out_dim,))


def _reference(x, scales, y=None):
    # Pure-JAX reference mirroring the torch code, for verification.
    shape = list(x.shape[:-1]) + [-1]
    x_enc = (x[..., None, :] * scales[:, None]).reshape(shape)
    x_enc = jnp.concatenate([x_enc, x_enc + 0.5 * jnp.pi], -1)
    if y is not None:
        y_enc = (y[..., None, :] * (scales[:, None] ** 2)).reshape(shape)
        y_enc = jnp.concatenate([y_enc, y_enc], -1)
        return jnp.exp(-0.5 * y_enc) * jnp.sin(x_enc)
    return jnp.sin(x_enc)


if __name__ == "__main__":
    key = jax.random.PRNGKey(0)
    kx, ky, kx2, ky2 = jax.random.split(key, 4)

    # Small shapes consistent with the module: x is [batch, num_sample, 3].
    batch, num_sample = 2, 8
    min_deg, max_deg = 0, 4

    x = jax.random.normal(kx, (batch, num_sample, 3), dtype=jnp.float32)
    y = jax.random.uniform(ky, (batch, num_sample, 3), dtype=jnp.float32)

    pe = PositionalEncoding(min_deg, max_deg)

    out = pe(x)                                 # sin-only path (y=None)
    out = jax.block_until_ready(out)
    ref = _reference(x, pe.scales)
    assert out.shape == (batch, num_sample, pe.out_dim)
    assert jnp.allclose(out, ref, atol=1e-5, rtol=1e-5)

    out_ipe = pe(x, y)                          # integrated path (y provided)
    out_ipe = jax.block_until_ready(out_ipe)
    ref_ipe = _reference(x, pe.scales, y)
    assert out_ipe.shape == (batch, num_sample, pe.out_dim)
    assert jnp.allclose(out_ipe, ref_ipe, atol=1e-5, rtol=1e-5)

    # One more shape that exercises row padding (rows not a multiple of 128).
    pe10 = PositionalEncoding(0, 10)
    x2 = jax.random.normal(kx2, (3, 37, 3), dtype=jnp.float32)
    y2 = jax.random.uniform(ky2, (3, 37, 3), dtype=jnp.float32)
    out2 = jax.block_until_ready(pe10(x2, y2))
    ref2 = _reference(x2, pe10.scales, y2)
    assert out2.shape == (3, 37, pe10.out_dim)
    assert jnp.allclose(out2, ref2, atol=1e-5, rtol=1e-5)

    print("KERNEL_OK")
</pallas_src>

<mosaic_0001>
module attributes {stable_mosaic.version = 11 : i64} {
  func.func @_pe_kernel(%arg0: i32, %arg1: memref<3x128xf32, #tpu.memory_space<vmem>>, %arg2: memref<24x128xf32, #tpu.memory_space<vmem>>) attributes {dimension_semantics = [#tpu.dimension_semantics<parallel>], iteration_bounds = array<i64: 1>, scalar_prefetch = 0 : i64, scratch_operands = 0 : i64, tpu.core_type = #tpu.core_type<tc>, window_params = [{transform_indices = @transform_0, window_bounds = array<i64: 3, 128>}, {transform_indices = @transform_1, window_bounds = array<i64: 24, 128>}]} {
    %c0 = arith.constant 0 : index
    %c0_0 = arith.constant 0 : index
    %0 = vector.load %arg1[%c0, %c0_0] : memref<3x128xf32, #tpu.memory_space<vmem>>, vector<3x128xf32>
    %cst = arith.constant 1.000000e+00 : f32
    %1 = vector.broadcast %cst : f32 to vector<3x128xf32>
    %2 = arith.mulf %0, %1 : vector<3x128xf32>
    %3 = math.sin %2 : vector<3x128xf32>
    %c0_1 = arith.constant 0 : index
    %c0_2 = arith.constant 0 : index
    %4 = vector.load %arg2[%c0_1, %c0_2] : memref<24x128xf32, #tpu.memory_space<vmem>>, vector<3x128xf32>
    tpu.vector_store %arg2[%c0_1, %c0_2], %3 {strides = array<i32>} : memref<24x128xf32, #tpu.memory_space<vmem>>, vector<3x128xf32>,
    %5 = math.cos %2 : vector<3x128xf32>
    %c12 = arith.constant 12 : index
    %c0_3 = arith.constant 0 : index
    %6 = vector.load %arg2[%c12, %c0_3] : memref<24x128xf32, #tpu.memory_space<vmem>>, vector<3x128xf32>
    tpu.vector_store %arg2[%c12, %c0_3], %5 {strides = array<i32>} : memref<24x128xf32, #tpu.memory_space<vmem>>, vector<3x128xf32>,
    %cst_4 = arith.constant 2.000000e+00 : f32
    %7 = vector.broadcast %cst_4 : f32 to vector<3x128xf32>
    %8 = arith.mulf %0, %7 : vector<3x128xf32>
    %9 = math.sin %8 : vector<3x128xf32>
    %c3 = arith.constant 3 : index
    %c0_5 = arith.constant 0 : index
    %10 = vector.load %arg2[%c3, %c0_5] : memref<24x128xf32, #tpu.memory_space<vmem>>, vector<3x128xf32>
    tpu.vector_store %arg2[%c3, %c0_5], %9 {strides = array<i32>} : memref<24x128xf32, #tpu.memory_space<vmem>>, vector<3x128xf32>,
    %11 = math.cos %8 : vector<3x128xf32>
    %c15 = arith.constant 15 : index
    %c0_6 = arith.constant 0 : index
    %12 = vector.load %arg2[%c15, %c0_6] : memref<24x128xf32, #tpu.memory_space<vmem>>, vector<3x128xf32>
    tpu.vector_store %arg2[%c15, %c0_6], %11 {strides = array<i32>} : memref<24x128xf32, #tpu.memory_space<vmem>>, vector<3x128xf32>,
    %cst_7 = arith.constant 4.000000e+00 : f32
    %13 = vector.broadcast %cst_7 : f32 to vector<3x128xf32>
    %14 = arith.mulf %0, %13 : vector<3x128xf32>
    %15 = math.sin %14 : vector<3x128xf32>
    %c6 = arith.constant 6 : index
    %c0_8 = arith.constant 0 : index
    %16 = vector.load %arg2[%c6, %c0_8] : memref<24x128xf32, #tpu.memory_space<vmem>>, vector<3x128xf32>
    tpu.vector_store %arg2[%c6, %c0_8], %15 {strides = array<i32>} : memref<24x128xf32, #tpu.memory_space<vmem>>, vector<3x128xf32>,
    %17 = math.cos %14 : vector<3x128xf32>
    %c18 = arith.constant 18 : index
    %c0_9 = arith.constant 0 : index
    %18 = vector.load %arg2[%c18, %c0_9] : memref<24x128xf32, #tpu.memory_space<vmem>>, vector<3x128xf32>
    tpu.vector_store %arg2[%c18, %c0_9], %17 {strides = array<i32>} : memref<24x128xf32, #tpu.memory_space<vmem>>, vector<3x128xf32>,
    %cst_10 = arith.constant 8.000000e+00 : f32
    %19 = vector.broadcast %cst_10 : f32 to vector<3x128xf32>
    %20 = arith.mulf %0, %19 : vector<3x128xf32>
    %21 = math.sin %20 : vector<3x128xf32>
    %c9 = arith.constant 9 : index
    %c0_11 = arith.constant 0 : index
    %22 = vector.load %arg2[%c9, %c0_11] : memref<24x128xf32, #tpu.memory_space<vmem>>, vector<3x128xf32>
    tpu.vector_store %arg2[%c9, %c0_11], %21 {strides = array<i32>} : memref<24x128xf32, #tpu.memory_space<vmem>>, vector<3x128xf32>,
    %23 = math.cos %20 : vector<3x128xf32>
    %c21 = arith.constant 21 : index
    %c0_12 = arith.constant 0 : index
    %24 = vector.load %arg2[%c21, %c0_12] : memref<24x128xf32, #tpu.memory_space<vmem>>, vector<3x128xf32>
    tpu.vector_store %arg2[%c21, %c0_12], %23 {strides = array<i32>} : memref<24x128xf32, #tpu.memory_space<vmem>>, vector<3x128xf32>,
    return
  }
  func.func @transform_0(%arg0: i32) -> (i32, i32) {
    %c0_i32 = arith.constant 0 : i32
    %c0_i32_0 = arith.constant 0 : i32
    return %c0_i32, %arg0 : i32, i32
  }
  func.func @transform_1(%arg0: i32) -> (i32, i32) {
    %c0_i32 = arith.constant 0 : i32
    %c0_i32_0 = arith.constant 0 : i32
    return %c0_i32, %arg0 : i32, i32
  }
}

</mosaic_0001>

<bundles_post_ra>
// kernel: tpu_custom_call.1
= control target key start
LH: loop header
LB: loop body
LE: loop exit
PB: predicated region body
PF: predicated region fallthrough
CT: control target
= control target key end

     0   :  { %6 = vsyncpa [#allocation3], 0  ;;  %s1326_s0 = inlined_call_operand.hbm [shape: f32[3,128], index: 0, kind: input, shape index: {}]   ;;  %s1327_s1 = inlined_call_operand.hbm [shape: f32[24,128], index: 1, kind: output, shape index: {}]  }
   0x1   :  { %7 = vsyncpa [#allocation4], 0  ;;  %s996_s6 = smov [#allocation2]  }
   0x2   :  { %s14_s7 = sshll.u32 %s996_s6, 4  ;;  %s15_s7 = int_to_ptr.vmem [resolvable:$true] %s14_s7 }
   0x3   :  { %s960_s8 = scalar_lea.vmem %s15_s7, 64  ;;  %p965_p1 = scmp.lt.s32.totalorder %s15_s7, %s15_s7 }
   0x4   :  { %p961_p0 = scmp.ne.s32.totalorder %s15_s7, %s960_s8  ;;  %p966_p2 = scmp.lt.s32.totalorder %s960_s8, %s960_s8 }
   0x6   :  { %p967_p3 = por %p966_p2, %p965_p1 }
   0x8   :  { %p968_p4 = pnand %p967_p3, %p961_p0 }
   0xa   :  { %971 = shalt.err (!%p968_p4)
}
   0xb   :  { %17 = dma.hbm_to_vmem [thread:$0]  %s1326_s0, 64, %s15_s7, [#allocation3]  }
   0xc   :  { %992 = dma.done.wait [#allocation3], 64  }
   0xd   :  { %993 = vsyncadd [#allocation3], 4294967232  ;;  %v1019_v0 = vld [vmem:[#allocation2] sm:$0x7]  ;;  %v997_v26 = vmov 683565275  }
   0xe   :  { %v22_v1 = vand.u32 2147483647, %v1019_v0  ;;  %v25_v2 = vand.u32 2139095040, %v1019_v0  ;;  %v1024_v3 = vmul.f32 2.0, %v1019_v0  ;;  %v1027_v4 = vmul.f32 4.0, %v1019_v0  ;;  %s1003_s0 = smov [#allocation5]  }
   0xf   :  { %v998_v28 = vmov 2475754826   ;;  %v999_v30 = vmov 2131351028   ;;  %v1000_v32 = vmov 2102212464  }
  0x10   :  { %v26_v5 = vshrl.u32 %v25_v2, 23  ;;  %v29_v6 = vand.u32 8388607, %v22_v1  ;;  %v232_v7 = vand.u32 2147483647, %v1024_v3  ;;  %v235_v8 = vand.u32 2139095040, %v1024_v3 }
  0x11   :  { %v445_v12 = vand.u32 2139095040, %v1027_v4  ;;  %v1001_v34 = vmov 920167782   ;;  %v1002_v41 = vmov 1326507024   ;;  %vm24_vm13 = vcmp.lt.s32.totalorder %v1019_v0, 0 }
  0x12   :  { %v878_v9 = vadd.s32 4294967169, %v26_v5  ;;  %v236_v10 = vshrl.u32 %v235_v8, 23  ;;  %v239_v11 = vand.u32 8388607, %v232_v7  ;;  %v30_v14 = vor.u32 8388608, %v29_v6  ;;  %s866_s11 = sshll.u32 %s1003_s0, 4  ;;  %s867_s11 = int_to_ptr.vmem [resolvable:$true] %s866_s11 }
  0x13   :  { %v446_v17 = vshrl.u32 %v445_v12, 23  ;;  %vm1136_vm14 = vcmp.le.f32.partialorder %v22_v1, 0.7853982  ;;  %s972_s12 = scalar_lea.vmem %s867_s11, 384  ;;  %p977_p6 = scmp.lt.s32.totalorder %s867_s11, %s867_s11 }
  0x14   :  { %v32_v13 = vadd.s32 1, %v878_v9  ;;  %v886_v15 = vadd.s32 4294967169, %v236_v10  ;;  %v240_v16 = vor.u32 8388608, %v239_v11  ;;  %v1036_v22 = vshll.u32 %v30_v14, 8  ;;  %p973_p5 = scmp.ne.s32.totalorder %s867_s11, %s972_s12  ;;  %p978_p7 = scmp.lt.s32.totalorder %s972_s12, %s972_s12 }
  0x15   :  { %v1040_v24 = vadd.s32 4294967169, %v446_v17 }
  0x16   :  { %vm33_vm0 = vcmp.gt.s32.totalorder %v32_v13, 0  ;;  %v242_v19 = vadd.s32 1, %v886_v15  ;;  %v1038_v23 = vshll.u32 %v240_v16, 8  ;;  %p979_p8 = por %p978_p7, %p977_p6 }
  0x17   :  { %v34_v18 = vsel %vm33_vm0, %v32_v13, 0 }
  0x18   :  { %v35_v20 = vshrl.u32 %v34_v18, 5  ;;  %v36_v21 = vand.u32 31, %v34_v18  ;;  %vm243_vm1 = vcmp.gt.s32.totalorder %v242_v19, 0  ;;  %p980_p9 = pnand %p979_p8, %p973_p5 }
  0x19   :  { %v244_v46 = vsel %vm243_vm1, %v242_v19, 0 }
  0x1a   :  { %v37_v25 = vsub.s32 32, %v36_v21  ;;  %v39_v27 = vshll.u32 %v997_v26, %v36_v21  ;;  %v42_v29 = vshll.u32 %v998_v28, %v36_v21  ;;  %v45_v31 = vshll.u32 %v999_v30, %v36_v21 }
  0x1b   :  { %v48_v33 = vshll.u32 %v1000_v32, %v36_v21  ;;  %v51_v35 = vshll.u32 %v1001_v34, %v36_v21  ;;  %vm54_vm2 = vcmp.lt.s32.totalorder %v35_v20, 1  ;;  %vm55_vm3 = vcmp.lt.s32.totalorder %v35_v20, 2 }
  0x1c   :  { %v38_v36 = vshrl.u32 %v997_v26, %v37_v25  ;;  %v40_v37 = vshrl.u32 %v998_v28, %v37_v25  ;;  %v43_v38 = vshrl.u32 %v999_v30, %v37_v25  ;;  %v46_v39 = vshrl.u32 %v1000_v32, %v37_v25 }
  0x1d   :  { %v49_v40 = vshrl.u32 %v1001_v34, %v37_v25  ;;  %v52_v42 = vshrl.u32 %v1002_v41, %v37_v25  ;;  %vm56_vm4 = vcmp.lt.s32.totalorder %v35_v20, 3  ;;  %vm57_vm5 = vcmp.lt.s32.totalorder %v35_v20, 4 }
  0x1e   :  { %v41_v43 = vor.u32 %v40_v37, %v39_v27  ;;  %v44_v44 = vor.u32 %v43_v38, %v42_v29  ;;  %v47_v45 = vor.u32 %v46_v39, %v45_v31  ;;  %v245_v49 = vshrl.u32 %v244_v46, 5 }
  0x1f   :  { %v50_v47 = vor.u32 %v49_v40, %v48_v33  ;;  %v53_v48 = vor.u32 %v52_v42, %v51_v35  ;;  %v246_v50 = vand.u32 31, %v244_v46  ;;  %v452_v29 = vadd.s32 1, %v1040_v24 }
  0x20   :  { %v58_v51 = vsel %vm54_vm2, %v38_v36, %v41_v43  ;;  %v59_v52 = vsel %vm57_vm5, %v47_v45, 2102212464  ;;  %v62_v53 = vsel %vm54_vm2, %v41_v43, %v44_v44  ;;  %v66_v54 = vsel %vm54_vm2, %v44_v44, %v47_v45 }
  0x21   :  { %v60_v55 = vsel %vm56_vm4, %v44_v44, %v59_v52  ;;  %v63_v56 = vsel %vm57_vm5, %v50_v47, 920167782  ;;  %v67_v57 = vsel %vm57_vm5, %v53_v48, 1326507024  ;;  %v247_v58 = vsub.s32 32, %v246_v50 }
  0x22   :  { %v61_v59 = vsel %vm55_vm3, %v58_v51, %v60_v55  ;;  %v64_v60 = vsel %vm56_vm4, %v47_v45, %v63_v56  ;;  %v68_v61 = vsel %vm56_vm4, %v50_v47, %v67_v57  ;;  %v249_v62 = vshll.u32 %v997_v26, %v246_v50 }
  0x23   :  { %v65_v63 = vsel %vm55_vm3, %v62_v53, %v64_v60  ;;  %v69_v2 = vsel %vm55_vm3, %v66_v54, %v68_v61  ;;  %v77_v5 = vmul.u32 %v1036_v22, %v61_v59  ;;  %v248_v6 = vshrl.u32 %v997_v26, %v247_v58 }
  0x24   :  { %v1067_v8 = vmul.u32.u64.low %v1036_v22, %v69_v2  ;;  %v1068_v9 = vmul.u32.u64.high %v1036_v22, %v69_v2, %v1067_v8  ;;  %v1071_v10 = vmul.u32.u64.low %v1036_v22, %v65_v63  ;;  %v1072_v11 = vmul.u32.u64.high %v1036_v22, %v65_v63, %v1071_v10 }
  0x25   :  { %v250_v12 = vshrl.u32 %v998_v28, %v247_v58  ;;  %v252_v13 = vshll.u32 %v998_v28, %v246_v50  ;;  %v253_v14 = vshrl.u32 %v999_v30, %v247_v58  ;;  %v255_v15 = vshll.u32 %v999_v30, %v246_v50 }
  0x26   :  { %v256_v16 = vshrl.u32 %v1000_v32, %v247_v58  ;;  %v258_v17 = vshll.u32 %v1000_v32, %v246_v50  ;;  %v259_v18 = vshrl.u32 %v1001_v34, %v247_v58  ;;  %v261_v19 = vshll.u32 %v1001_v34, %v246_v50 }
  0x27   :  { %v251_v20 = vor.u32 %v250_v12, %v249_v62  ;;  %v254_v21 = vor.u32 %v253_v14, %v252_v13  ;;  %v262_v22 = vshrl.u32 %v1002_v41, %v247_v58  ;;  %vm264_vm6 = vcmp.lt.s32.totalorder %v245_v49, 1 }
  0x28   :  { %vm79_vm7 = vc.u32 %v1068_v9, %v1071_v10  ;;  %v80_v25 = vadd.s32 1, %v1072_v11  ;;  %v257_v27 = vor.u32 %v256_v16, %v255_v15  ;;  %v260_v31 = vor.u32 %v259_v18, %v258_v17 }
  0x29   :  { %v263_v33 = vor.u32 %v262_v22, %v261_v19  ;;  %vm265_vm8 = vcmp.lt.s32.totalorder %v245_v49, 2  ;;  %vm266_vm9 = vcmp.lt.s32.totalorder %v245_v49, 3  ;;  %vm267_vm10 = vcmp.lt.s32.totalorder %v245_v49, 4 }
  0x2a   :  { %v81_v35 = vsel %vm79_vm7, %v80_v25, %v1072_v11  ;;  %v268_v36 = vsel %vm264_vm6, %v248_v6, %v251_v20  ;;  %v272_v37 = vsel %vm264_vm6, %v251_v20, %v254_v21  ;;  %v269_v39 = vsel %vm267_vm10, %v257_v27, 2102212464 }
  0x2b   :  { %v82_v38 = vadd.s32 %v81_v35, %v77_v5  ;;  %v273_v40 = vsel %vm267_vm10, %v260_v31, 920167782  ;;  %v276_v42 = vsel %vm264_vm6, %v254_v21, %v257_v27  ;;  %v270_v43 = vsel %vm266_vm9, %v254_v21, %v269_v39 }
  0x2c   :  { %v274_v44 = vsel %vm266_vm9, %v257_v27, %v273_v40  ;;  %v277_v45 = vsel %vm267_vm10, %v263_v33, 1326507024  ;;  %vm453_vm11 = vcmp.gt.s32.totalorder %v452_v29, 0  ;;  %v442_v48 = vand.u32 2147483647, %v1027_v4 }
  0x2d   :  { %v83_v24 = vadd.s32 536870912, %v82_v38  ;;  %v275_v46 = vsel %vm265_vm8, %v272_v37, %v274_v44  ;;  %v278_v47 = vsel %vm266_vm9, %v260_v31, %v277_v45  ;;  %v271_v50 = vsel %vm265_vm8, %v268_v36, %v270_v43 }
  0x2e   :  { %v279_v51 = vsel %vm265_vm8, %v276_v42, %v278_v47  ;;  %v1097_v52 = vmul.u32.u64.low %v1038_v23, %v275_v46  ;;  %v1098_v53 = vmul.u32.u64.high %v1038_v23, %v275_v46, %v1097_v52  ;;  %v454_v57 = vsel %vm453_vm11, %v452_v29, 0 }
  0x2f   :  { %v84_v54 = vshrl.u32 %v83_v24, 30  ;;  %v1102_v55 = vmul.u32.u64.low %v1038_v23, %v279_v51  ;;  %v1103_v56 = vmul.u32.u64.high %v1038_v23, %v279_v51, %v1102_v55  ;;  %v456_v58 = vand.u32 31, %v454_v57 }
  0x30   :  { %v287_v60 = vmul.u32 %v1038_v23, %v271_v50  ;;  %v1107_v61 = vmul.f32 8.0, %v1019_v0  ;;  %v290_v49 = vadd.s32 1, %v1098_v53  ;;  %v449_v62 = vand.u32 8388607, %v442_v48 }
  0x31   :  { %v85_v59 = vshll.u32 %v84_v54, 30  ;;  %vm289_vm12 = vc.u32 %v1103_v56, %v1097_v52  ;;  %v457_v6 = vsub.s32 32, %v456_v58  ;;  %v108_v13 = vsub.s32 4, %v84_v54 }
  0x32   :  { %v652_v2 = vand.u32 2147483647, %v1107_v61  ;;  %v291_v5 = vsel %vm289_vm12, %v290_v49, %v1098_v53  ;;  %v450_v23 = vor.u32 8388608, %v449_v62  ;;  %v655_v14 = vand.u32 2139095040, %v1107_v61 }
  0x33   :  { %v86_v63 = vsub.s32 %v82_v38, %v85_v59  ;;  %v292_v11 = vadd.s32 %v291_v5, %v287_v60  ;;  %v459_v17 = vshll.u32 %v997_v26, %v456_v58  ;;  %v460_v18 = vshrl.u32 %v998_v28, %v457_v6 }
  0x34   :  { %v1119_v15 = vand.u32 8388607, %v652_v2  ;;  %v462_v19 = vshll.u32 %v998_v28, %v456_v58  ;;  %v463_v21 = vshrl.u32 %v999_v30, %v457_v6  ;;  %v465_v22 = vshll.u32 %v999_v30, %v456_v58 }
  0x35   :  { %v88_v8 = vsub.s32 0, %v86_v63  ;;  %v293_v16 = vadd.s32 536870912, %v292_v11  ;;  %v466_v25 = vshrl.u32 %v1000_v32, %v457_v6  ;;  %v78_v27 = vadd.s32 %v1071_v10, %v1068_v9 }
  0x36   :  { %v1132_v31 = vshll.u32 %v450_v23, 8  ;;  %v455_v36 = vshrl.u32 %v454_v57, 5  ;;  %v468_v37 = vshll.u32 %v1000_v32, %v456_v58  ;;  %v469_v38 = vshrl.u32 %v1001_v34, %v457_v6 }
  0x37   :  { %v879_v12 = vmin.u32 %v88_v8, %v86_v63  ;;  %v1130_v29 = vshrl.u32 %v293_v16, 30  ;;  %v109_v39 = vsel %vm24_vm13, %v108_v13, %v84_v54  ;;  %v656_v10 = vshrl.u32 %v655_v14, 23 }
  0x38   :  { %v660_v40 = vor.u32 8388608, %v1119_v15  ;;  %v461_v42 = vor.u32 %v460_v18, %v459_v17  ;;  %v464_v1 = vor.u32 %v463_v21, %v462_v19  ;;  %v467_v43 = vor.u32 %v466_v25, %v465_v22 }
  0x39   :  { %v90_v20 = vclz %v879_v12  ;;  %v295_v9 = vshll.u32 %v1130_v29, 30  ;;  %v471_v24 = vshll.u32 %v1001_v34, %v456_v58  ;;  %v472_v46 = vshrl.u32 %v1002_v41, %v457_v6 }
  0x3a   :  { %v470_v53 = vor.u32 %v469_v38, %v468_v37  ;;  %v458_v55 = vshrl.u32 %v997_v26, %v457_v6  ;;  %vm474_vm0 = vcmp.lt.s32.totalorder %v455_v36, 1  ;;  %vm477_vm1 = vcmp.lt.s32.totalorder %v455_v36, 4 }
  0x3b   :  { %v880_v35 = vadd.s32 4294967294, %v90_v20  ;;  %v1146_v45 = vsub.s32 %v292_v11, %v295_v9  ;;  %v288_v60 = vadd.s32 %v1097_v52, %v1103_v56  ;;  %v479_v49 = vsel %vm477_vm1, %v467_v43, 2102212464 }
  0x3c   :  { %v473_v62 = vor.u32 %v472_v46, %v471_v24  ;;  %vm475_vm2 = vcmp.lt.s32.totalorder %v455_v36, 2  ;;  %vm476_vm3 = vcmp.lt.s32.totalorder %v455_v36, 3  ;;  %v482_v8 = vsel %vm474_vm0, %v461_v42, %v464_v1 }
  0x3d   :  { %vm881_vm15 = vcmp.lt.s32.totalorder %v880_v35, 0  ;;  %v298_v54 = vsub.s32 0, %v1146_v45  ;;  %v483_v6 = vsel %vm477_vm1, %v470_v53, 920167782  ;;  %v111_v11 = vsel %vm1136_vm14, 0, %v109_v39 }
  0x3e   :  { %v93_v44 = vsel %vm881_vm15, 0, %v880_v35  ;;  %vm234_vm4 = vcmp.lt.s32.totalorder %v1024_v3, 0  ;;  %v478_v52 = vsel %vm474_vm0, %v458_v55, %v461_v42  ;;  %v480_v56 = vsel %vm476_vm3, %v464_v1, %v479_v49 }
  0x3f   :  { %v94_v47 = vsub.s32 32, %v93_v44  ;;  %v95_v50 = vshll.u32 %v86_v63, %v93_v44  ;;  %v98_v51 = vsub.s32 4294967266, %v93_v44  ;;  %v887_v58 = vmin.u32 %v298_v54, %v1146_v45 }
  0x40   :  { %v484_v14 = vsel %vm476_vm3, %v467_v43, %v483_v6  ;;  %v486_v16 = vsel %vm474_vm0, %v464_v1, %v467_v43  ;;  %v318_v18 = vsub.s32 4, %v1130_v29  ;;  %v487_v20 = vsel %vm477_vm1, %v473_v62, 1326507024 }
  0x41   :  { %v96_v57 = vshrl.u32 %v78_v27, %v94_v47  ;;  %v99_v59 = vadd.s32 127, %v98_v51  ;;  %v300_v23 = vclz %v887_v58  ;;  %v485_v19 = vsel %vm475_vm2, %v482_v8, %v484_v14 }
  0x42   :  { %vm1170_vm5 = vcmp.le.f32.partialorder %v232_v7, 0.7853982  ;;  %v488_v25 = vsel %vm476_vm3, %v470_v53, %v487_v20  ;;  %v1176_v27 = vmul.u32.u64.low %v1132_v31, %v485_v19  ;;  %v1177_v35 = vmul.u32.u64.high %v1132_v31, %v485_v19, %v1176_v27 }
  0x43   :  { %v97_v63 = vor.u32 %v96_v57, %v95_v50  ;;  %v100_v5 = vshll.u32 %v99_v59, 23  ;;  %v888_v17 = vadd.s32 4294967294, %v300_v23  ;;  %v481_v37 = vsel %vm475_vm2, %v478_v52, %v480_v56 }
  0x44   :  { %v489_v38 = vsel %vm475_vm2, %v486_v16, %v488_v25  ;;  %v902_v39 = vadd.s32 4294967169, %v656_v10  ;;  %v115_v50 = vadd.s32 3, %v111_v11  ;;  %v497_v51 = vmul.u32 %v1132_v31, %v481_v37 }
  0x45   :  { %v101_v12 = vor.u32 4788187, %v100_v5  ;;  %v104_v13 = vcvt.s32.f32 %v97_v63  ;;  %vm889_vm6 = vcmp.lt.s32.totalorder %v888_v17, 0  ;;  %v500_v53 = vadd.s32 1, %v1177_v35 }
  0x46   :  { %v303_v42 = vsel %vm889_vm6, 0, %v888_v17  ;;  %v1183_v7 = vmul.u32.u64.low %v1132_v31, %v489_v38  ;;  %v1184_v1 = vmul.u32.u64.high %v1132_v31, %v489_v38, %v1183_v7  ;;  %v662_v46 = vadd.s32 1, %v902_v39 }
  0x47   :  { %v102_v21 = vand.u32 2147483647, %v101_v12  ;;  %v304_v43 = vsub.s32 32, %v303_v42  ;;  %v305_v44 = vshll.u32 %v1146_v45, %v303_v42  ;;  %v308_v24 = vsub.s32 4294967266, %v303_v42 }
  0x48   :  { %v1189_v36 = vand.u32 3, %v111_v11  ;;  %vm663_vm7 = vcmp.gt.s32.totalorder %v662_v46, 0  ;;  %v319_v45 = vsel %vm234_vm4, %v318_v18, %v1130_v29  ;;  %vm499_vm8 = vc.u32 %v1184_v1, %v1176_v27 }
  0x49   :  { %v105_v9 = vmul.f32 %v104_v13, %v102_v21  ;;  %v306_v10 = vshrl.u32 %v288_v60, %v304_v43  ;;  %v309_v54 = vadd.s32 127, %v308_v24  ;;  %v664_v57 = vsel %vm663_vm7, %v662_v46, 0 }
  0x4a   :  { %v501_v60 = vsel %vm499_vm8, %v500_v53, %v1177_v35  ;;  %v1202_v58 = vand.u32 3, %v115_v50  ;;  %v666_v63 = vand.u32 31, %v664_v57  ;;  %v321_v8 = vsel %vm1170_vm5, 0, %v319_v45 }
  0x4b   :  { %v106_v47 = vxor.u32 2147483648, %v105_v9  ;;  %v307_v59 = vor.u32 %v306_v10, %v305_v44  ;;  %v310_v49 = vshll.u32 %v309_v54, 23  ;;  %v502_v62 = vadd.s32 %v501_v60, %v497_v51 }
  0x4c   :  { %v667_v11 = vsub.s32 32, %v666_v63  ;;  %v669_v33 = vshll.u32 %v997_v26, %v666_v63  ;;  %v672_v23 = vshll.u32 %v998_v28, %v666_v63  ;;  %v675_v56 = vshll.u32 %v999_v30, %v666_v63 }
  0x4d   :  { %v107_v55 = vsel %vm24_vm13, %v106_v47, %v105_v9  ;;  %v311_v5 = vor.u32 4788187, %v310_v49  ;;  %v314_v29 = vcvt.s32.f32 %v307_v59  ;;  %v503_v6 = vadd.s32 536870912, %v502_v62 }
  0x4e   :  { %v110_v31 = vsel %vm1136_vm14, %v1019_v0, %v107_v55  ;;  %v678_v12 = vshll.u32 %v1000_v32, %v666_v63  ;;  %v681_v13 = vshll.u32 %v1001_v34, %v666_v63  ;;  %v1213_v16 = vshrl.u32 %v664_v57, 5 }
  0x4f   :  { %936 = vcosq.f32 %v110_v31  ;;  %v312_v52 = vand.u32 2147483647, %v311_v5  ;;  %v1211_v14 = vshrl.u32 %v503_v6, 30  ;;  %v670_v17 = vshrl.u32 %v998_v28, %v667_v11 }
  0x50   :  { %938 = vsinq.f32 %v110_v31  ;;  %v673_v18 = vshrl.u32 %v999_v30, %v667_v11  ;;  %v676_v20 = vshrl.u32 %v1000_v32, %v667_v11  ;;  %v679_v21 = vshrl.u32 %v1001_v34, %v667_v11 }
  0x51   :  { %v315_v19 = vmul.f32 %v314_v29, %v312_v52  ;;  %v682_v25 = vshrl.u32 %v1002_v41, %v667_v11  ;;  %v505_v35 = vshll.u32 %v1211_v14, 30  ;;  %v668_v37 = vshrl.u32 %v997_v26, %v667_v11 }
  0x52   :  { %v671_v38 = vor.u32 %v670_v17, %v669_v33  ;;  %v674_v39 = vor.u32 %v673_v18, %v672_v23  ;;  %v677_v42 = vor.u32 %v676_v20, %v675_v56  ;;  %v680_v7 = vor.u32 %v679_v21, %v678_v12 }
  0x53   :  { %v316_v9 = vxor.u32 2147483648, %v315_v19  ;;  %v683_v43 = vor.u32 %v682_v25, %v681_v13  ;;  %vm114_vm9 = vweird.f32 %v1019_v0  ;;  %vm221_vm10 = vcmp.lt.s32.totalorder %v1189_v36, 2 }
  0x54   :  { %vm222_vm11 = vcmp.eq.s32.totalorder %v1189_v36, 0  ;;  %v1225_v28 = vsub.s32 %v502_v62, %v505_v35  ;;  %vm684_vm12 = vcmp.lt.s32.totalorder %v1213_v16, 1  ;;  %vm117_vm13 = vcmp.lt.s32.totalorder %v1202_v58, 2 }
  0x55   :  { %vm118_vm14 = vcmp.eq.s32.totalorder %v1202_v58, 0  ;;  %vm225_vm15 = vcmp.eq.s32.totalorder %v1189_v36, 2  ;;  %v317_v26 = vsel %vm234_vm4, %v316_v9, %v315_v19  ;;  %v325_v32 = vadd.s32 3, %v321_v8 }
  0x56   :  { %v320_v30 = vsel %vm1170_vm5, %v1024_v3, %v317_v26  ;;  %v508_v34 = vsub.s32 0, %v1225_v28  ;;  %vm687_vm0 = vcmp.lt.s32.totalorder %v1213_v16, 4  ;;  %v688_v41 = vsel %vm684_vm12, %v668_v37, %v671_v38 }
  0x57   :  { %940 = vcosq.f32 %v320_v30  ;;  %v689_v44 = vsel %vm687_vm0, %v677_v42, 2102212464  ;;  %v692_v24 = vsel %vm684_vm12, %v671_v38, %v674_v39  ;;  %vm121_vm1 = vcmp.eq.s32.totalorder %v1202_v58, 2 }
  0x58   :  { %942 = vsinq.f32 %v320_v30  ;;  %v895_v22 = vmin.u32 %v508_v34, %v1225_v28  ;;  %vm686_vm2 = vcmp.lt.s32.totalorder %v1213_v16, 3  ;;  %v1247_v47 = vand.u32 3, %v321_v8 }
  0x59   :  { %vm685_vm3 = vcmp.lt.s32.totalorder %v1213_v16, 2  ;;  %v690_v50 = vsel %vm686_vm2, %v674_v39, %v689_v44  ;;  %v693_v51 = vsel %vm687_vm0, %v680_v7, 920167782  ;;  %v326_v54 = vand.u32 3, %v325_v32 }
  0x5a   :  { %v510_v55 = vclz %v895_v22  ;;  %v700_v45 = vshll.u32 %v660_v40, 8  ;;  %v498_v31 = vadd.s32 %v1176_v27, %v1184_v1  ;;  %v691_v59 = vsel %vm685_vm3, %v688_v41, %v690_v50 }
  0x5b   :  { %v694_v49 = vsel %vm686_vm2, %v677_v42, %v693_v51  ;;  %v696_v1 = vsel %vm684_vm12, %v674_v39, %v677_v42  ;;  %v697_v5 = vsel %vm687_vm0, %v683_v43, 1326507024  ;;  %vm328_vm5 = vcmp.eq.s32.totalorder %v326_v54, 0 }
  0x5c   :  { %v937_v46 = vpop.eup %936  ;;  %v896_v63 = vadd.s32 4294967294, %v510_v55  ;;  %v695_v15 = vsel %vm685_vm3, %v692_v24, %v694_v49  ;;  %v698_v6 = vsel %vm686_vm2, %v680_v7, %v697_v5  ;;  %vm431_vm6 = vcmp.lt.s32.totalorder %v1247_v47, 2 }
  0x5d   :  { %v939_v53 = vpop.eup %938  ;;  %v122_v10 = vxor.u32 2147483648, %v937_v46  ;;  %v699_v52 = vsel %vm685_vm3, %v696_v1, %v698_v6  ;;  %v1292_v17 = vmul.u32.u64.low %v700_v45, %v695_v15  ;;  %v1293_v18 = vmul.u32.u64.high %v700_v45, %v695_v15, %v1292_v17 }
  0x5e   :  { %v119_v57 = vxor.u32 2147483648, %v939_v53  ;;  %vm897_vm4 = vcmp.lt.s32.totalorder %v896_v63, 0  ;;  %v1289_v12 = vmul.u32.u64.low %v700_v45, %v699_v52  ;;  %v1290_v13 = vmul.u32.u64.high %v700_v45, %v699_v52, %v1289_v12 }
  0x5f   :  { %v123_v60 = vsel %vm121_vm1, %v122_v10, %v939_v53  ;;  %v227_v62 = vsel %vm225_vm15, %v122_v10, %v939_v53  ;;  %v513_v23 = vsel %vm897_vm4, 0, %v896_v63  ;;  %vm432_vm7 = vcmp.eq.s32.totalorder %v1247_v47, 0 }
  0x60   :  { %v120_v40 = vsel %vm118_vm14, %v937_v46, %v119_v57  ;;  %v224_v27 = vsel %vm222_vm11, %v937_v46, %v119_v57  ;;  %v514_v58 = vsub.s32 32, %v513_v23  ;;  %v515_v36 = vshll.u32 %v1225_v28, %v513_v23 }
  0x61   :  { %v124_v29 = vsel %vm117_vm13, %v120_v40, %v123_v60  ;;  %v228_v8 = vsel %vm221_vm10, %v224_v27, %v227_v62  ;;  %v518_v56 = vsub.s32 4294967266, %v513_v23  ;;  %vm435_vm8 = vcmp.eq.s32.totalorder %v1247_v47, 2 }
  0x62   :  { %v125_v11 = vsel %vm114_vm9, nan, %v124_v29  ;;  %v229_v33 = vsel %vm114_vm9, nan, %v228_v8  ;;  %v516_v19 = vshrl.u32 %v498_v31, %v514_v58  ;;  %vm331_vm9 = vcmp.eq.s32.totalorder %v326_v54, 2 }
  0x63   :  { %126 = vst [vmem:[#allocation5] sm:$0x7] %v125_v11  ;;  %230 = vst [vmem:[#allocation5 + $0xc] sm:$0x7] %v229_v33  ;;  %v519_v20 = vadd.s32 127, %v518_v56  ;;  %v707_v25 = vmul.u32 %v700_v45, %v691_v59  ;;  %v708_v38 = vadd.s32 %v1292_v17, %v1290_v13  ;;  %vm709_vm10 = vc.u32 %v1290_v13, %v1292_v17 }
  0x64   :  { %v941_v0 = vpop.eup %940  ;;  %v517_v16 = vor.u32 %v516_v19, %v515_v36  ;;  %v710_v39 = vadd.s32 1, %v1293_v18  ;;  %vm327_vm11 = vcmp.lt.s32.totalorder %v326_v54, 2  ;;  %vm324_vm12 = vweird.f32 %v1024_v3 }
  0x65   :  { %v520_v21 = vshll.u32 %v519_v20, 23  ;;  %v943_v35 = vpop.eup %942  ;;  %v332_v37 = vxor.u32 2147483648, %v941_v0  ;;  %vm444_vm13 = vcmp.lt.s32.totalorder %v1027_v4, 0  ;;  %v528_v51 = vsub.s32 4, %v1211_v14 }
  0x66   :  { %v329_v9 = vxor.u32 2147483648, %v943_v35  ;;  %v524_v7 = vcvt.s32.f32 %v517_v16  ;;  %v711_v26 = vsel %vm709_vm10, %v710_v39, %v1293_v18  ;;  %vm443_vm14 = vcmp.le.f32.partialorder %v442_v48, 0.7853982 }
  0x67   :  { %v521_v42 = vor.u32 4788187, %v520_v21  ;;  %v333_v43 = vsel %vm331_vm9, %v332_v37, %v943_v35  ;;  %v437_v28 = vsel %vm435_vm8, %v332_v37, %v943_v35  ;;  %v712_v41 = vadd.s32 %v711_v26, %v707_v25 }
  0x68   :  { %v330_v30 = vsel %vm328_vm5, %v941_v0, %v329_v9  ;;  %v434_v32 = vsel %vm432_vm7, %v941_v0, %v329_v9  ;;  %v529_v47 = vsel %vm444_vm13, %v528_v51, %v1211_v14  ;;  %vm534_vm4 = vweird.f32 %v1027_v4 }
  0x69   :  { %v522_v34 = vand.u32 2147483647, %v521_v42  ;;  %v334_v44 = vsel %vm327_vm11, %v330_v30, %v333_v43  ;;  %v438_v24 = vsel %vm431_vm6, %v434_v32, %v437_v28  ;;  %v713_v50 = vadd.s32 536870912, %v712_v41 }
  0x6a   :  { %v335_v22 = vsel %vm324_vm12, nan, %v334_v44  ;;  %v439_v46 = vsel %vm324_vm12, nan, %v438_v24  ;;  %v531_v31 = vsel %vm443_vm14, 0, %v529_v47  ;;  %vm654_vm7 = vcmp.lt.s32.totalorder %v1107_v61, 0 }
  0x6b   :  { %v525_v3 = vmul.f32 %v524_v7, %v522_v34  ;;  %336 = vst [vmem:[#allocation5 + $0x3] sm:$0x7] %v335_v22  ;;  %440 = vst [vmem:[#allocation5 + $0xf] sm:$0x7] %v439_v46  ;;  %v714_v10 = vshrl.u32 %v713_v50, 30  ;;  %v535_v60 = vadd.s32 3, %v531_v31 }
  0x6c   :  { %v640_v40 = vand.u32 3, %v531_v31  ;;  %vm653_vm8 = vcmp.le.f32.partialorder %v652_v2, 0.7853982 }
  0x6d   :  { %v526_v53 = vxor.u32 2147483648, %v525_v3  ;;  %v715_v55 = vshll.u32 %v714_v10, 30  ;;  %v536_v15 = vand.u32 3, %v535_v60  ;;  %v738_v21 = vsub.s32 4, %v714_v10 }
  0x6e   :  { %vm642_vm1 = vcmp.eq.s32.totalorder %v640_v40, 0  ;;  %vm645_vm2 = vcmp.eq.s32.totalorder %v640_v40, 2  ;;  %vm641_vm6 = vcmp.lt.s32.totalorder %v640_v40, 2 }
  0x6f   :  { %v527_v54 = vsel %vm444_vm13, %v526_v53, %v525_v3  ;;  %v716_v57 = vsub.s32 %v712_v41, %v715_v55  ;;  %vm541_vm0 = vcmp.eq.s32.totalorder %v536_v15, 2  ;;  %vm538_vm3 = vcmp.eq.s32.totalorder %v536_v15, 0 }
  0x70   :  { %v530_v45 = vsel %vm443_vm14, %v1027_v4, %v527_v54  ;;  %vm537_vm5 = vcmp.lt.s32.totalorder %v536_v15, 2  ;;  %v739_v37 = vsel %vm654_vm7, %v738_v21, %v714_v10 }
  0x71   :  { %944 = vcosq.f32 %v530_v45  ;;  %v718_v59 = vsub.s32 0, %v716_v57  ;;  %v741_v39 = vsel %vm653_vm8, 0, %v739_v37 }
  0x72   :  { %946 = vsinq.f32 %v530_v45  ;;  %v745_v9 = vadd.s32 3, %v741_v39  ;;  %v850_v7 = vand.u32 3, %v741_v39 }
  0x73   :  { %v903_v49 = vmin.u32 %v718_v59, %v716_v57 }
  0x74   :  { %v746_v42 = vand.u32 3, %v745_v9  ;;  %vm855_vm10 = vcmp.eq.s32.totalorder %v850_v7, 2  ;;  %vm852_vm12 = vcmp.eq.s32.totalorder %v850_v7, 0  ;;  %vm851_vm14 = vcmp.lt.s32.totalorder %v850_v7, 2 }
  0x75   :  { %v720_v62 = vclz %v903_v49 }
  0x76   :  { %vm751_vm9 = vcmp.eq.s32.totalorder %v746_v42, 2  ;;  %vm748_vm11 = vcmp.eq.s32.totalorder %v746_v42, 0  ;;  %vm747_vm13 = vcmp.lt.s32.totalorder %v746_v42, 2 }
  0x77   :  { %v904_v63 = vadd.s32 4294967294, %v720_v62 }
  0x79   :  { %vm905_vm15 = vcmp.lt.s32.totalorder %v904_v63, 0 }
  0x7a   :  { %v723_v48 = vsel %vm905_vm15, 0, %v904_v63  ;;  %vm744_vm15 = vweird.f32 %v1107_v61 }
  0x7b   :  { %v724_v27 = vsub.s32 32, %v723_v48  ;;  %v725_v1 = vshll.u32 %v716_v57, %v723_v48  ;;  %v728_v5 = vsub.s32 4294967266, %v723_v48 }
  0x7d   :  { %v726_v6 = vshrl.u32 %v708_v38, %v724_v27  ;;  %v729_v11 = vadd.s32 127, %v728_v5 }
  0x7e   :  { %v945_v29 = vpop.eup %944 }
  0x7f   :  { %v947_v14 = vpop.eup %946  ;;  %v542_v8 = vxor.u32 2147483648, %v945_v29  ;;  %v727_v58 = vor.u32 %v726_v6, %v725_v1  ;;  %v730_v36 = vshll.u32 %v729_v11, 23 }
  0x80   :  { %v539_v33 = vxor.u32 2147483648, %v947_v14 }
  0x81   :  { %v543_v23 = vsel %vm541_vm0, %v542_v8, %v947_v14  ;;  %v647_v52 = vsel %vm645_vm2, %v542_v8, %v947_v14  ;;  %v731_v18 = vor.u32 4788187, %v730_v36  ;;  %v734_v19 = vcvt.s32.f32 %v727_v58 }
  0x82   :  { %v540_v56 = vsel %vm538_vm3, %v945_v29, %v539_v33  ;;  %v644_v12 = vsel %vm642_vm1, %v945_v29, %v539_v33 }
  0x83   :  { %v544_v13 = vsel %vm537_vm5, %v540_v56, %v543_v23  ;;  %v648_v17 = vsel %vm641_vm6, %v644_v12, %v647_v52  ;;  %v732_v16 = vand.u32 2147483647, %v731_v18 }
  0x84   :  { %v545_v20 = vsel %vm534_vm4, nan, %v544_v13  ;;  %v649_v0 = vsel %vm534_vm4, nan, %v648_v17 }
  0x85   :  { %546 = vst [vmem:[#allocation5 + $0x6] sm:$0x7] %v545_v20  ;;  %650 = vst [vmem:[#allocation5 + $0x12] sm:$0x7] %v649_v0  ;;  %v735_v4 = vmul.f32 %v734_v19, %v732_v16 }
  0x87   :  { %v736_v25 = vxor.u32 2147483648, %v735_v4 }
  0x89   :  { %v737_v35 = vsel %vm654_vm7, %v736_v25, %v735_v4 }
  0x8a   :  { %v740_v38 = vsel %vm653_vm8, %v1107_v61, %v737_v35 }
  0x8b   :  { %948 = vcosq.f32 %v740_v38 }
  0x8c   :  { %950 = vsinq.f32 %v740_v38 }
  0x98   :  { %v949_v43 = vpop.eup %948 }
  0x99   :  { %v951_v28 = vpop.eup %950  ;;  %v752_v26 = vxor.u32 2147483648, %v949_v43 }
  0x9a   :  { %v749_v2 = vxor.u32 2147483648, %v951_v28 }
  0x9b   :  { %v753_v30 = vsel %vm751_vm9, %v752_v26, %v951_v28  ;;  %v857_v32 = vsel %vm855_vm10, %v752_v26, %v951_v28 }
  0x9c   :  { %v750_v34 = vsel %vm748_vm11, %v949_v43, %v749_v2  ;;  %v854_v41 = vsel %vm852_vm12, %v949_v43, %v749_v2 }
  0x9d   :  { %v754_v44 = vsel %vm747_vm13, %v750_v34, %v753_v30  ;;  %v858_v24 = vsel %vm851_vm14, %v854_v41, %v857_v32 }
  0x9e   :  { %v755_v22 = vsel %vm744_vm15, nan, %v754_v44  ;;  %v859_v46 = vsel %vm744_vm15, nan, %v858_v24 }
  0x9f   :  { %756 = vst [vmem:[#allocation5 + $0x9] sm:$0x7] %v755_v22  ;;  %860 = vst [vmem:[#allocation5 + $0x15] sm:$0x7] %v859_v46 }
  0xa0   :  { %983 = shalt.err (!%p980_p9)
}
  0xa1   :  { %s1004_s13 = smov 128   ;;  %s1005_s14 = smov 8  }
  0xa2   :  { %872 = dma.vmem_to_hbm [thread:$0]  %s867_s11, 384, %s1327_s1, [#allocation4], %s1004_s13, %s1004_s13, %s1005_s14  }
  0xa3   :  { %994 = dma.done.wait [#allocation4], 384  }
  0xa4   :  { %995 = vsyncadd [#allocation4], 4294966912 }
  0xa5   :  { %876 = vsyncpa [#allocation3], 1 }
  0xa6   :  { %877 = vsyncpa [#allocation4], 1 }

</bundles_post_ra>
